<compile_context>
chip_gen: v5e
topology: v5e:2x2
jax: 0.10.0
libtpu: 0.0.40
codegen_flags: <defaults>
</compile_context>

<pallas_src>
import jax
import jax.numpy as jnp
from jax.experimental import pallas as pl
from jax.experimental.pallas import tpu as pltpu


def _round_up(x, m):
    return ((x + m - 1) // m) * m


def _cdiv(a, b):
    return (a + b - 1) // b


def _sae_kernel(x_ref, we_ref, be_ref, wd_ref, bd_ref, dec_ref, asum_ref):
    """One (batch-tile i, hidden-tile h) grid step."""
    h = pl.program_id(1)

    # -- encoder tile: relu(x @ We[:, h] + be[h]); bf16 MXU feed, f32 accum ----
    enc = jnp.dot(x_ref[...], we_ref[...], preferred_element_type=jnp.float32)
    enc = jnp.maximum(enc + be_ref[...].astype(jnp.float32), 0.0)     # [TB, TH] f32

    # -- partial column sums for the running-mean epilogue (unmasked slab) -----
    colsum = jnp.sum(enc, axis=0, keepdims=True)                      # [1, TH]
    asum_ref[...] = jnp.broadcast_to(colsum, asum_ref.shape)          # [8, TH]

    # -- decoder: accumulate enc_tile @ Wd[h, :] directly in the f32 output ----
    part = jnp.dot(enc.astype(wd_ref.dtype), wd_ref[...],
                   preferred_element_type=jnp.float32)                # [TB, Dp]

    @pl.when(h == 0)
    def _():
        dec_ref[...] = part + bd_ref[...].astype(jnp.float32)         # bias folded in

    @pl.when(h > 0)
    def _():
        dec_ref[...] += part


def sparse_autoencoder_forward(x, w_enc, b_enc, w_dec, b_dec, running_mean,
                               *, momentum, sparsity_lambda,
                               tb=None, th=None,
                               compute_dtype=jnp.bfloat16, out_dtype=None):
    """x: [B, D]; w_enc: [D, H]; b_enc: [1, H]; w_dec: [H, D]; b_dec: [1, D];
    running_mean: [1, H].  Returns (decoded [B, D], loss scalar, new_rm [1, H])."""
    B, D = x.shape
    H = w_enc.shape[1]
    out_dtype = out_dtype or x.dtype
    b_enc = jnp.reshape(b_enc, (1, H))
    b_dec = jnp.reshape(b_dec, (1, D))
    running_mean = jnp.reshape(running_mean, (1, H)).astype(jnp.float32)

    # ---- tile sizes -----------------------------------------------------------
    Dp = _round_up(D, 128)                         # lane-dense decoded stores
    if tb is None:
        tb = 512                                   # arithmetic-intensity driver
        if 256 <= B <= tb:                         # keep >=2 batch tiles (v7x 2 TCs)
            tb = _round_up(_cdiv(B, 2), 8)
    if th is None:
        th = 512
    TB = max(8, _round_up(min(tb, _round_up(B, 8)), 8))
    TH = max(128, _round_up(min(th, _round_up(H, 128)), 128))

    # ---- generation-aware VMEM budget + automatic tile shrink -----------------
    try:
        vmem_cap = int(getattr(pltpu.get_tpu_info(), "vmem_capacity_bytes", 0)) \
            or (64 << 20)
    except Exception:
        vmem_cap = 64 << 20                        # conservative (v7x per-TC)
    budget = min((vmem_cap * 3) // 4, 100 << 20)   # ~48 MiB v7x / ~96-100 MiB v5e,v6e

    cb = jnp.dtype(compute_dtype).itemsize

    def vmem_est(tb_, th_):
        dbl = 2 * (tb_ * Dp * cb                   # x tile
                   + Dp * th_ * cb                 # w_enc tile
                   + 8 * th_ * 4                   # b_enc tile (sublane-padded)
                   + th_ * Dp * cb                 # w_dec tile
                   + 8 * Dp * 4                    # b_dec tile
                   + tb_ * Dp * 4                  # decoded output (f32 accumulator)
                   + 8 * th_ * 4)                  # activation-sum slab
        return dbl + (2 << 20)

    while vmem_est(TB, TH) > budget and TH > 128:
        TH = max(128, _round_up(TH // 2, 128))
    while vmem_est(TB, TH) > budget and TB > 8:
        TB = max(8, _round_up(TB // 2, 8))

    Bp = _round_up(B, TB)
    Hp = _round_up(H, TH)
    nb, nh = Bp // TB, Hp // TH

    def pad2(a, s0, s1, dtype):
        p0, p1 = s0 - a.shape[0], s1 - a.shape[1]
        if p0 or p1:
            a = jnp.pad(a, ((0, p0), (0, p1)))
        return a.astype(dtype)

    xp = pad2(x, Bp, Dp, compute_dtype)            # bf16 x: halves x DMA bytes
    wep = pad2(w_enc, Dp, Hp, compute_dtype)       # bf16 weights: 2x MXU, 2x HBM BW
    bep = pad2(b_enc, 1, Hp, jnp.float32)
    wdp = pad2(w_dec, Hp, Dp, compute_dtype)
    bdp = pad2(b_dec, 1, Dp, jnp.float32)

    vmem_limit = int(min(max(vmem_est(TB, TH) + (4 << 20), 32 << 20),
                         budget + (4 << 20), vmem_cap))

    decoded_p, asum_p = pl.pallas_call(
        _sae_kernel,
        grid=(nb, nh),
        in_specs=[
            pl.BlockSpec((TB, Dp), lambda i, h: (i, 0)),   # x tile (constant over h)
            pl.BlockSpec((Dp, TH), lambda i, h: (0, h)),   # encoder weight tile
            pl.BlockSpec((1, TH), lambda i, h: (0, h)),    # encoder bias tile
            pl.BlockSpec((TH, Dp), lambda i, h: (h, 0)),   # decoder weight tile
            pl.BlockSpec((1, Dp), lambda i, h: (0, 0)),    # decoder bias
        ],
        out_specs=[
            pl.BlockSpec((TB, Dp), lambda i, h: (i, 0)),   # decoded (f32, accumulated)
            pl.BlockSpec((8, TH), lambda i, h: (i, h)),    # per-tile activation sums
        ],
        out_shape=[
            jax.ShapeDtypeStruct((Bp, Dp), jnp.float32),
            jax.ShapeDtypeStruct((8 * nb, Hp), jnp.float32),
        ],
        compiler_params=pltpu.CompilerParams(
            dimension_semantics=("parallel", "arbitrary"),
            vmem_limit_bytes=vmem_limit),
    )(xp, wep, bep, wdp, bdp)

    decoded = decoded_p[:B, :D]
    if decoded.dtype != out_dtype:
        decoded = decoded.astype(out_dtype)

    # ---- tiny O(H) epilogue done once, outside the hot loop -------------------
    act_sum = jnp.sum(asum_p.reshape(nb, 8, Hp)[:, 0, :], axis=0)[:H]   # [H]
    if Bp != B:
        # padded (zero) batch rows each contribute exactly relu(b_enc)
        act_sum = act_sum - (Bp - B) * jnp.maximum(
            b_enc.reshape(-1).astype(jnp.float32), 0.0)
    act_mean = act_sum / B
    new_rm = momentum * running_mean.reshape(-1) + (1.0 - momentum) * act_mean
    loss = jnp.mean(sparsity_lambda * (jnp.log(sparsity_lambda) - new_rm))
    return decoded, loss, new_rm.reshape(1, H)


def _reference(x, w_enc, b_enc, w_dec, b_dec, running_mean,
               momentum, sparsity_lambda, compute_dtype=jnp.float32):
    enc = jnp.maximum(
        jnp.dot(x.astype(compute_dtype), w_enc.astype(compute_dtype),
                preferred_element_type=jnp.float32) + b_enc, 0.0)
    dec = jnp.dot(enc.astype(compute_dtype), w_dec.astype(compute_dtype),
                  preferred_element_type=jnp.float32) + b_dec
    new_rm = momentum * running_mean + (1.0 - momentum) * enc.mean(axis=0,
                                                                   keepdims=True)
    loss = jnp.mean(sparsity_lambda * (jnp.log(sparsity_lambda) - new_rm))
    return dec, loss, new_rm


if __name__ == "__main__":
    # Small shapes consistent with the module (hidden_dim > input_dim).
    batch, input_dim, hidden_dim = 20, 48, 160
    momentum, sparsity_lambda = 0.9, 0.05

    key = jax.random.PRNGKey(0)
    kx, k1, k2, k3, k4 = jax.random.split(key, 5)
    x = jax.random.normal(kx, (batch, input_dim), jnp.float32)
    # deterministic synthetic parameter init (not a checkpoint load)
    w_enc = jax.random.normal(k1, (input_dim, hidden_dim), jnp.float32) * 0.1
    b_enc = jax.random.normal(k2, (1, hidden_dim), jnp.float32) * 0.01
    w_dec = jax.random.normal(k3, (hidden_dim, input_dim), jnp.float32) * 0.1
    b_dec = jax.random.normal(k4, (1, input_dim), jnp.float32) * 0.01
    running_mean = jnp.zeros((1, hidden_dim), jnp.float32)  # train_running_mean_activation

    # (a) explicit small tiles: 3 batch tiles (last partial -> padded-row
    #     correction) x 2 hidden tiles (decoder accumulation path)
    dec_a, loss_a, rm_a = sparse_autoencoder_forward(
        x, w_enc, b_enc, w_dec, b_dec, running_mean,
        momentum=momentum, sparsity_lambda=sparsity_lambda, tb=8, th=128)
    # (b) default auto tile selection path
    dec_b, loss_b, rm_b = sparse_autoencoder_forward(
        x, w_enc, b_enc, w_dec, b_dec, running_mean,
        momentum=momentum, sparsity_lambda=sparsity_lambda)
    jax.block_until_ready((dec_a, loss_a, rm_a, dec_b, loss_b, rm_b))

    # bf16-matmul reference (same precision as the kernel's MXU feed)
    ref_dec_bf, ref_loss_bf, ref_rm_bf = _reference(
        x, w_enc, b_enc, w_dec, b_dec, running_mean,
        momentum, sparsity_lambda, compute_dtype=jnp.bfloat16)
    # full f32 reference (original module semantics)
    ref_dec, ref_loss, ref_rm = _reference(
        x, w_enc, b_enc, w_dec, b_dec, running_mean,
        momentum, sparsity_lambda, compute_dtype=jnp.float32)

    for dec, loss, rm in ((dec_a, loss_a, rm_a), (dec_b, loss_b, rm_b)):
        assert dec.shape == (batch, input_dim)
        assert rm.shape == (1, hidden_dim)
        # tight vs same-precision (bf16 MXU) reference
        assert jnp.allclose(dec, ref_dec_bf, atol=5e-3, rtol=5e-3), "decoded vs bf16 ref"
        assert jnp.allclose(rm, ref_rm_bf, atol=1e-3, rtol=1e-3), "running-mean vs bf16 ref"
        assert jnp.allclose(loss, ref_loss_bf, atol=1e-4, rtol=1e-4), "loss vs bf16 ref"
        # loose vs full-f32 module reference (bf16 operand drift)
        assert jnp.allclose(dec, ref_dec, atol=5e-2, rtol=5e-2), "decoded vs f32 ref"
        assert jnp.allclose(rm, ref_rm, atol=2e-3, rtol=2e-3), "running-mean vs f32 ref"
        assert jnp.allclose(loss, ref_loss, atol=1e-3, rtol=1e-3), "loss vs f32 ref"

    # TODO(synk): get_normalization/get_activation are external; this kernel
    # concretizes norm_type='none' + activation='relu'. The in-place
    # nn.Parameter running-mean update is returned functionally (new_rm).
    print("KERNEL_OK")
</pallas_src>

<mosaic_0001>
module attributes {stable_mosaic.version = 11 : i64} {
  func.func @_sae_kernel(%arg0: i32, %arg1: i32, %arg2: memref<8x128xbf16, #tpu.memory_space<vmem>>, %arg3: memref<128x128xbf16, #tpu.memory_space<vmem>>, %arg4: memref<1x128xf32, #tpu.memory_space<vmem>>, %arg5: memref<128x128xbf16, #tpu.memory_space<vmem>>, %arg6: memref<1x128xf32, #tpu.memory_space<vmem>>, %arg7: memref<8x128xf32, #tpu.memory_space<vmem>>, %arg8: memref<8x128xf32, #tpu.memory_space<vmem>>) attributes {dimension_semantics = [#tpu.dimension_semantics<parallel>, #tpu.dimension_semantics<arbitrary>], iteration_bounds = array<i64: 3, 2>, scalar_prefetch = 0 : i64, scratch_operands = 0 : i64, tpu.core_type = #tpu.core_type<tc>, window_params = [{transform_indices = @transform_0, window_bounds = array<i64: 8, 128>}, {transform_indices = @transform_1, window_bounds = array<i64: 128, 128>}, {transform_indices = @transform_2, window_bounds = array<i64: 1, 128>}, {transform_indices = @transform_3, window_bounds = array<i64: 128, 128>}, {pipeline_mode = #tpu.pipeline_mode<synchronous>, transform_indices = @transform_4, window_bounds = array<i64: 1, 128>}, {transform_indices = @transform_5, window_bounds = array<i64: 8, 128>}, {transform_indices = @transform_6, window_bounds = array<i64: 8, 128>}]} {
    %c0 = arith.constant 0 : index
    %c0_0 = arith.constant 0 : index
    %0 = vector.load %arg2[%c0, %c0_0] : memref<8x128xbf16, #tpu.memory_space<vmem>>, vector<8x128xbf16>
    %c0_1 = arith.constant 0 : index
    %c0_2 = arith.constant 0 : index
    %1 = vector.load %arg3[%c0_1, %c0_2] : memref<128x128xbf16, #tpu.memory_space<vmem>>, vector<128x128xbf16>
    %cst = arith.constant dense<0.000000e+00> : vector<8x128xf32>
    %2 = tpu.matmul %0, %1, %cst {dimension_numbers = #tpu.dot_dimension_numbers<[1], [0], [0], [1], [0, 0, 1, 1], [], []>} : vector<8x128xbf16>, vector<128x128xbf16>, vector<8x128xf32> -> vector<8x128xf32>
    %c0_3 = arith.constant 0 : index
    %c0_4 = arith.constant 0 : index
    %3 = vector.load %arg4[%c0_3, %c0_4] : memref<1x128xf32, #tpu.memory_space<vmem>>, vector<1x128xf32>
    %4 = vector.broadcast %3 : vector<1x128xf32> to vector<8x128xf32>
    %5 = arith.addf %2, %4 : vector<8x128xf32>
    %cst_5 = arith.constant 0.000000e+00 : f32
    %6 = vector.broadcast %cst_5 : f32 to vector<8x128xf32>
    %7 = arith.maximumf %5, %6 : vector<8x128xf32>
    %cst_6 = arith.constant dense<0.000000e+00> : vector<128xf32>
    %8 = vector.multi_reduction <add>, %7, %cst_6 [0] : vector<8x128xf32> to vector<128xf32>
    %9 = vector.shape_cast %8 : vector<128xf32> to vector<1x128xf32>
    %10 = vector.shape_cast %9 : vector<1x128xf32> to vector<1x128xf32>
    %11 = vector.broadcast %10 : vector<1x128xf32> to vector<8x128xf32>
    %c0_7 = arith.constant 0 : index
    %c0_8 = arith.constant 0 : index
    %12 = vector.load %arg8[%c0_7, %c0_8] : memref<8x128xf32, #tpu.memory_space<vmem>>, vector<8x128xf32>
    tpu.vector_store %arg8[%c0_7, %c0_8], %11 {strides = array<i32>} : memref<8x128xf32, #tpu.memory_space<vmem>>, vector<8x128xf32>,
    %13 = arith.truncf %7 : vector<8x128xf32> to vector<8x128xbf16>
    %c0_9 = arith.constant 0 : index
    %c0_10 = arith.constant 0 : index
    %14 = vector.load %arg5[%c0_9, %c0_10] : memref<128x128xbf16, #tpu.memory_space<vmem>>, vector<128x128xbf16>
    %cst_11 = arith.constant dense<0.000000e+00> : vector<8x128xf32>
    %15 = tpu.matmul %13, %14, %cst_11 {dimension_numbers = #tpu.dot_dimension_numbers<[1], [0], [0], [1], [0, 0, 1, 1], [], []>} : vector<8x128xbf16>, vector<128x128xbf16>, vector<8x128xf32> -> vector<8x128xf32>
    %c0_i32 = arith.constant 0 : i32
    %16 = arith.cmpi eq, %arg1, %c0_i32 : i32
    %17 = arith.extui %16 : i1 to i32
    %c0_i32_12 = arith.constant 0 : i32
    %18 = arith.cmpi ne, %17, %c0_i32_12 : i32
    scf.if %18 {
      %c0_15 = arith.constant 0 : index
      %c0_16 = arith.constant 0 : index
      %22 = vector.load %arg6[%c0_15, %c0_16] : memref<1x128xf32, #tpu.memory_space<vmem>>, vector<1x128xf32>
      %23 = vector.broadcast %22 : vector<1x128xf32> to vector<8x128xf32>
      %24 = arith.addf %15, %23 : vector<8x128xf32>
      %c0_17 = arith.constant 0 : index
      %c0_18 = arith.constant 0 : index
      %25 = vector.load %arg7[%c0_17, %c0_18] : memref<8x128xf32, #tpu.memory_space<vmem>>, vector<8x128xf32>
      tpu.vector_store %arg7[%c0_17, %c0_18], %24 {strides = array<i32>} : memref<8x128xf32, #tpu.memory_space<vmem>>, vector<8x128xf32>,
    } else {
    }
    %c0_i32_13 = arith.constant 0 : i32
    %19 = arith.cmpi sgt, %arg1, %c0_i32_13 : i32
    %20 = arith.extui %19 : i1 to i32
    %c0_i32_14 = arith.constant 0 : i32
    %21 = arith.cmpi ne, %20, %c0_i32_14 : i32
    scf.if %21 {
      %c0_15 = arith.constant 0 : index
      %c0_16 = arith.constant 0 : index
      %22 = vector.load %arg7[%c0_15, %c0_16] : memref<8x128xf32, #tpu.memory_space<vmem>>, vector<8x128xf32>
      %23 = arith.addf %22, %15 : vector<8x128xf32>
      %c0_17 = arith.constant 0 : index
      %c0_18 = arith.constant 0 : index
      %24 = vector.load %arg7[%c0_17, %c0_18] : memref<8x128xf32, #tpu.memory_space<vmem>>, vector<8x128xf32>
      tpu.vector_store %arg7[%c0_17, %c0_18], %23 {strides = array<i32>} : memref<8x128xf32, #tpu.memory_space<vmem>>, vector<8x128xf32>,
    } else {
    }
    return
  }
  func.func @transform_0(%arg0: i32, %arg1: i32) -> (i32, i32) {
    %c0_i32 = arith.constant 0 : i32
    %c0_i32_0 = arith.constant 0 : i32
    return %arg0, %c0_i32 : i32, i32
  }
  func.func @transform_1(%arg0: i32, %arg1: i32) -> (i32, i32) {
    %c0_i32 = arith.constant 0 : i32
    %c0_i32_0 = arith.constant 0 : i32
    return %c0_i32, %arg1 : i32, i32
  }
  func.func @transform_2(%arg0: i32, %arg1: i32) -> (i32, i32) {
    %c0_i32 = arith.constant 0 : i32
    %c0_i32_0 = arith.constant 0 : i32
    return %c0_i32, %arg1 : i32, i32
  }
  func.func @transform_3(%arg0: i32, %arg1: i32) -> (i32, i32) {
    %c0_i32 = arith.constant 0 : i32
    %c0_i32_0 = arith.constant 0 : i32
    return %arg1, %c0_i32 : i32, i32
  }
  func.func @transform_4(%arg0: i32, %arg1: i32) -> (i32, i32) {
    %c0_i32 = arith.constant 0 : i32
    %c0_i32_0 = arith.constant 0 : i32
    %c0_i32_1 = arith.constant 0 : i32
    return %c0_i32, %c0_i32_0 : i32, i32
  }
  func.func @transform_5(%arg0: i32, %arg1: i32) -> (i32, i32) {
    %c0_i32 = arith.constant 0 : i32
    %c0_i32_0 = arith.constant 0 : i32
    return %arg0, %c0_i32 : i32, i32
  }
  func.func @transform_6(%arg0: i32, %arg1: i32) -> (i32, i32) {
    %c0_i32 = arith.constant 0 : i32
    return %arg0, %arg1 : i32, i32
  }
}

</mosaic_0001>

<bundles_post_ra>
// kernel: tpu_custom_call.1
= control target key start
LH: loop header
LB: loop body
LE: loop exit
PB: predicated region body
PF: predicated region fallthrough
CT: control target
= control target key end

     0   :  { %s1790_s0 = inlined_call_operand.hbm [shape: bf16[24,128], index: 0, kind: input, shape index: {}]   ;;  %s1791_s1 = inlined_call_operand.hbm [shape: bf16[128,256], index: 1, kind: input, shape index: {}]   ;;  %s1792_s2 = inlined_call_operand.hbm [shape: f32[1,256], index: 2, kind: input, shape index: {}]   ;;  %s1793_s3 = inlined_call_operand.hbm [shape: bf16[256,128], index: 3, kind: input, shape index: {}]   ;;  %s1794_s4 = inlined_call_operand.vmem [shape: f32[1,128], index: 4, kind: input, shape index: {}]   ;;  %s1795_s5 = inlined_call_operand.hbm [shape: f32[24,128], index: 5, kind: output, shape index: {0}]   ;;  %s1796_s6 = inlined_call_operand.hbm [shape: f32[24,256], index: 6, kind: output, shape index: {1}]  }
   0x1   :  { %1817 = sst [smem:[#allocation34_spill]] %s1790_s0 }
   0x2   :  { %1818 = sst [smem:[#allocation35_spill]] %s1791_s1 }
   0x3   :  { %1819 = sst [smem:[#allocation36_spill]] %s1792_s2 }
   0x4   :  { %1820 = sst [smem:[#allocation37_spill]] %s1794_s4 }
   0x5   :  { %1821 = sst [smem:[#allocation38_spill]] %s1795_s5 }
   0x6   :  { %1822 = sst [smem:[#allocation39_spill]] %s1796_s6 }
   0x7   :  { %12 = vsyncpa [#allocation3], 0 }
   0x8   :  { %14 = vsyncpa [#allocation3 + $0x1], 0 }
   0x9   :  { %15 = vsyncpa [#allocation6], 0 }
   0xa   :  { %17 = vsyncpa [#allocation6 + $0x1], 0 }
   0xb   :  { %18 = vsyncpa [#allocation9], 0 }
   0xc   :  { %20 = vsyncpa [#allocation9 + $0x1], 0 }
   0xd   :  { %21 = vsyncpa [#allocation4], 0 }
   0xe   :  { %23 = vsyncpa [#allocation4 + $0x1], 0 }
   0xf   :  { %24 = vsyncpa [#allocation12], 0 }
  0x10   :  { %26 = vsyncpa [#allocation12 + $0x1], 0  ;;  %s1414_s21 = smov 0   ;;  %s1416_s22 = smov 0  }
  0x11   :  { %s1418_s23 = smov 0   ;;  %s1420_s24 = smov 0  }
  0x12   :  { %s1422_s25 = smov 0   ;;  %s1424_s26 = smov 0  }
  0x13   :  { %s1426_s27 = smov 0   ;;  %s1428_s28 = smov 0  }
  0x14   :  { %s1430_s29 = smov 0   ;;  %s1432_s30 = smov 0  }
  0x15   :  { %s1434_s7 = smov 0   ;;  %s1436_s8 = smov 0  }
  0x16   :  { %s1438_s9 = smov 0   ;;  %s1440_s10 = smov 0  }
  0x17 LB: > { %1823 = sst [smem:[#allocation18_spill]] %s1322_s21  ;;  %p59_p0 = scmp.eq.s32.totalorder %s1374_s10, 0  ;;  %s1374_s10 = sphi %s1440_s10, %s32_s10   ;;  %s1370_s9 = sphi %s1438_s9, %s1885_s9   ;;  %s1366_s8 = sphi %s1436_s8, %s1884_s8   ;;  %s1362_s7 = sphi %s1434_s7, %s1876_s7   ;;  %s1358_s30 = sphi %s1432_s30, %s1883_s30   ;;  %s1354_s29 = sphi %s1430_s29, %s1875_s29   ;;  %s1350_s28 = sphi %s1428_s28, %s1882_s28   ;;  %s1346_s27 = sphi %s1426_s27, %s1881_s27   ;;  %s1342_s26 = sphi %s1424_s26, %s1873_s26   ;;  %s1338_s25 = sphi %s1422_s25, %s1872_s25   ;;  %s1334_s24 = sphi %s1420_s24, %s1871_s24   ;;  %s1330_s23 = sphi %s1418_s23, %s1870_s23   ;;  %s1326_s22 = sphi %s1416_s22, %s1880_s22   ;;  %s1322_s21 = sphi %s1414_s21, %s1879_s21  }
  0x18   : > { %1824 = sst [smem:[#allocation19_spill]] %s1330_s23  ;;  %p84_p1 = scmp.ne.s32.totalorder %s1342_s26, %s1338_s25 }
  0x19   : > { %1825 = sst [smem:[#allocation20_spill]] %s1338_s25  ;;  %p1806_p2 = scmp.lt.s32.totalorder %s1374_s10, 6 }
  0x1a   : > { %1826 = sst [smem:[#allocation21_spill]] %s1342_s26  ;;  %p86_p3 = por %p84_p1, %p59_p0 }
  0x1b   : > { %1827 = sst [smem:[#allocation22_spill]] %s1354_s29  ;;  %s263_s11 = sand.u32 1, %s1374_s10  }
  0x1c   : > { %1828 = sst [smem:[#allocation23_spill]] %s1358_s30  ;;  %s1492_s12 = sand.u32 1, %s1342_s26  }
  0x1d   : > { %1829 = sst [smem:[#allocation24_spill]] %s1362_s7  ;;  %s1798_s13 = sshll.u32 %s1492_s12, 6 }
  0x1e   : > { %1830 = sst [smem:[#allocation25_spill]] %s1370_s9  ;;  %s817_s14 = sshll.u32 %s1366_s8, 2 }
  0x1f   : > { %s1831_s1 = sld [smem:[#allocation35_spill]]  ;;  %s267_s19 = scalar_lea.vmem [#allocation5], %s1798_s13 }
  0x20   : > { %s274_s20 = sshll.u32 %s267_s19, 4  ;;  %p1503_p4 = pnand %p1806_p2, %p86_p3  ;;  %s275_s20 = int_to_ptr.vmem [resolvable:$true] %s274_s20 }
  0x21   : > { %p821_p5 = scmp.ge.s32.totalorder %s1374_s10, 1  ;;  %s1376_s15 = smov 128  }
  0x22   : > { %s1800_s16 = smov 64   ;;  %p321_p6 = scmp.lt.s32.totalorder %s1374_s10, 7 }
  0x23   : > { %s811_s13 = sadd.s32 4294967294, %s1374_s10   ;;  %s44_s5 = sadd.s32 1, %s1370_s9 }
  0x24   : > { %p1516_p7 = pnand %p821_p5, %p321_p6  ;;  %p58_p9 = scmp.ne.s32.totalorder %s1354_s29, %s1350_s28 }
  0x25   : > { %s271_s17 = scalar_lea.hbm %s1831_s1, %s817_s14  ;;  %s1508_s14 = scalar_lea.sflag [#allocation6], %s263_s11 }
  0x26   : > { %s272_s18 = sshll.u32 %s271_s17, 4  ;;  %s1801_s17 = smov 4   ;;  %s273_s18 = int_to_ptr.hbm [resolvable:$true] %s272_s18 }
  0x27   : > { %935 = dma.hbm_to_vmem [thread:$0]  (!%p1503_p4), %s273_s18, 1024, %s275_s20, %s1508_s14, %s1376_s15, %s1800_s16, %s1801_s17  }
  0x28   : > { %s1521_s11 = sadd.s32 4294967295, %s1374_s10   ;;  %s41_s1 = sadd.s32 1, %s1366_s8 }
  0x29   : > { %p42_p8 = scmp.ge.s32.totalorder %s41_s1, 2  ;;  %s51_s18 = sadd.s32 1, %s1354_s29 }
  0x2a   : > { %p64_p10 = scmp.ne.s32.totalorder %s1350_s28, %s1346_s27  ;;  %p1539_p11 = por %p59_p0, %p58_p9 }
  0x2b   : > { %s1887_s1 = smov (%p42_p8, %s41_s1), 0  ;;  %s1889_s5 = smov (!%p42_p8, %s44_s5), %s1370_s9 }
  0x2c   : > { %1834 = sst [smem:[#allocation26_spill]] %s1887_s1  ;;  %p65_p12 = scmp.eq.s32.totalorder %s1521_s11, 0 }
  0x2d   : > { %p46_p13 = scmp.ge.s32.totalorder %s1889_s5, 3  ;;  %s74_s15 = ssub.s32 %s1366_s8, %s1887_s1 }
  0x2e   : > { %p1549_p1 = por %p65_p12, %p64_p10  ;;  %p75_p3 = scmp.eq.s32.totalorder %s74_s15, 0 }
  0x2f   : > { %s1891_s5 = smov (%p46_p13, %s1889_s5), 0  ;;  %s77_s17 = sadd.s32 1, %s1342_s26 }
  0x30   : > { %s1836_s16 = scalar_select %p1549_p1, 1, 0 }
  0x31   : > { %1838 = sst [smem:[#allocation28_spill]] %s1891_s5  ;;  %p90_p0 = scmp.ne.s32.totalorder %s1338_s25, %s1334_s24 }
  0x32   : > { %1837 = sst [smem:[#allocation27_spill]] %s1836_s16  ;;  %s48_s1 = ssub.s32 %s1370_s9, %s1891_s5 }
  0x33   : > { %p187_p5 = scmp.eq.s32.totalorder %s1521_s11, 5  ;;  %p49_p6 = scmp.eq.s32.totalorder %s48_s1, 0 }
  0x34   : > { %p1561_p8 = por %p90_p0, %p65_p12  ;;  %p193_p2 = scmp.eq.s32.totalorder %s811_s13, 5 }
  0x35   : > { %s1566_s4 = scalar_select %p75_p3, %s1342_s26, %s77_s17  }
  0x36   : > { %s1569_s30 = scalar_select %p49_p6, %s1354_s29, %s51_s18  }
  0x37   : > { %1840 = sst [smem:[#allocation29_spill]] %s1566_s4  ;;  %p1576_p13 = por %p187_p5, %p58_p9 }
  0x38   : > { %1841 = sst [smem:[#allocation30_spill]] %s1569_s30  ;;  %s201_s24 = sor.u32 %s74_s15, %s48_s1 }
  0x39   : > { %s204_s5 = sadd.s32 1, %s1330_s23  ;;  %p1584_p1 = por %p193_p2, %p64_p10 }
  0x3a   : > { %p202_p12 = scmp.eq.s32.totalorder %s201_s24, 0  ;;  %p214_p3 = scmp.ne.s32.totalorder %s1330_s23, %s1326_s22 }
  0x3b   : > { %s1843_s25 = scalar_select %p1584_p1, 1, 0 }
  0x3c   : > { %p220_p0 = scmp.ne.s32.totalorder %s1326_s22, %s1322_s21  ;;  %p1597_p9 = por %p214_p3, %p187_p5 }
  0x3d   : > { %1844 = sst [smem:[#allocation31_spill]] %s1843_s25  ;;  %s244_s13 = sand.u32 1, %s1354_s29  }
  0x3e   : > { %s1593_s17 = scalar_select %p202_p12, %s1330_s23, %s204_s5  }
  0x3f   : > { %p1601_p6 = por %p220_p0, %p193_p2  ;;  %s815_s15 = sshll.u32 %s1370_s9, 2 }
  0x40   : > { %1845 = sst [smem:[#allocation32_spill]] %s1593_s17  ;;  %s814_s30 = sshll.u32 %s244_s13, 2 }
  0x41   : > { %s1847_s1 = scalar_select %p1601_p6, 1, 0 }
  0x42   : > { %s1849_s0 = sld [smem:[#allocation34_spill]]  ;;  %s248_s17 = scalar_lea.vmem [#allocation2], %s814_s30 }
  0x43   : > { %1848 = sst [smem:[#allocation33_spill]] %s1847_s1  ;;  %s256_s23 = sshll.u32 %s248_s17, 4  ;;  %s257_s23 = int_to_ptr.vmem [resolvable:$true] %s256_s23 }
  0x44   : > { %p1850_p2 = scmp.lt.s32.totalorder %s1374_s10, 6  ;;  %s1851_s2 = sld [smem:[#allocation36_spill]] }
  0x45   : > { %s287_s21 = scalar_lea.vmem [#allocation7], %s1492_s12  ;;  %s1852_s30 = sshll.u32 %s1492_s12, 6 }
  0x46   : > { %p930_p10 = pnand %p1850_p2, %p1539_p11  ;;  %s294_s4 = sshll.u32 %s287_s21, 4  ;;  %s295_s4 = int_to_ptr.vmem [resolvable:$true] %s294_s4 }
  0x47   : > { %s305_s20 = scalar_lea.vmem [#allocation8], %s1852_s30  ;;  %s1853_s21 = smov 4  }
  0x48   : > { %s252_s26 = scalar_lea.hbm %s1849_s0, %s815_s15  ;;  %s245_s15 = scalar_lea.sflag [#allocation3], %s244_s13 }
  0x49   : > { %s254_s5 = sshll.u32 %s252_s26, 4  ;;  %s900_s26 = sshll.u32 %s1366_s8, 6  ;;  %s255_s5 = int_to_ptr.hbm [resolvable:$true] %s254_s5 }
  0x4a   : > { %s290_s9 = scalar_lea.hbm %s1851_s2, %s1366_s8  ;;  %s313_s17 = sshll.u32 %s305_s20, 4  ;;  %s314_s17 = int_to_ptr.vmem [resolvable:$true] %s313_s17 }
  0x4b   : > { %s292_s24 = sshll.u32 %s290_s9, 4  ;;  %s310_s29 = scalar_lea.hbm %s1793_s3, %s900_s26  ;;  %s293_s24 = int_to_ptr.hbm [resolvable:$true] %s292_s24 }
  0x4c   : > { %932 = dma.hbm_to_vmem [thread:$0]  (!%p930_p10), %s255_s5, 64, %s257_s23, %s245_s15  }
  0x4d   : > { %938 = dma.hbm_to_vmem [thread:$0]  (!%p1503_p4), %s293_s24, 16, %s295_s4, %s1508_s14  }
  0x4e   : > { %s311_s1 = sshll.u32 %s310_s29, 4  ;;  %s302_s2 = scalar_lea.sflag [#allocation9], %s1492_s12  ;;  %s312_s1 = int_to_ptr.hbm [resolvable:$true] %s311_s1 }
  0x4f   : > { %s1854_s9 = smov 64   ;;  %325 = sbr.rel (%p1516_p7) target bundleno = 464 (0x1d0), region = 40 }
  0x50   : > { %941 = dma.hbm_to_vmem [thread:$0]  (!%p1503_p4), %s312_s1, 1024, %s314_s17, %s302_s2, %s1854_s9, %s1854_s9, %s1853_s21  }
  0x51   : > { %s1855_s23 = sld [smem:[#allocation27_spill]] (!%p1516_p7)  ;;  %s1637_s14 = sand.u32 (!%p1516_p7), 1, %s1350_s28  }
  0x52   : > { %s822_s0 = sshll.u32 (!%p1516_p7), %s1637_s14, 2  ;;  %s328_s25 = scalar_lea.sflag (!%p1516_p7), [#allocation3], %s1637_s14 }
  0x53   : > { %s1641_s13 = scalar_lea.vmem (!%p1516_p7), [#allocation2], %s822_s0 }
  0x57   : > { %p1856_p11 = scmp.ne.s32.totalorder %s1855_s23, 0 }
  0x59   : > { %1301 = dma.done.wait (%p1856_p11), %s328_s25, 64  }
  0x5a   : > { %1303 = vsyncadd (%p1856_p11), %s328_s25, 4294967232  ;;  %s1857_s2 = sld [smem:[#allocation20_spill]]  ;;  %s337_s6 = sand.u32 1, %s1521_s11  }
  0x5b   : > { %s338_s5 = scalar_lea.sflag [#allocation6], %s337_s6 }
  0x60   : > { %s1649_s12 = sand.u32 1, %s1857_s2  }
  0x61   : > { %s823_s19 = sshll.u32 %s1649_s12, 6 }
  0x62   : > { %s1652_s4 = scalar_lea.vmem [#allocation5], %s823_s19 }
  0x63   : > { %1305 = dma.done.wait (%p1561_p8), %s338_s5, 1040  }
  0x64   : > { %1307 = vsyncadd (%p1561_p8), %s338_s5, 4294966256  ;;  %s350_s24 = scalar_lea.vmem [#allocation7], %s1649_s12  ;;  %s357_s15 = scalar_lea.sflag [#allocation9], %s1649_s12 }
  0x65   : > { %s1660_s26 = scalar_lea.vmem [#allocation8], %s823_s19 }
  0x66   : > { %1309 = dma.done.wait (%p1561_p8), %s357_s15, 1024  }
  0x67   : > { %1311 = vsyncadd (%p1561_p8), %s357_s15, 4294966272  ;;  %s825_s11 = sshll.u32 %s1637_s14, 3  ;;  %v908_v0 = vld [vmem:[%s1652_s4 + $0x38] sm:$0xff]  ;;  %v907_v1 = vld [vmem:[%s1652_s4 + $0x30] sm:$0xff]  ;;  %s406_s7 = sand.u32 1, %s1326_s22  }
  0x68   : > { %479 = vmatpush.bf16.msra.mxu0 %v908_v0  ;;  %v916_v2 = vld [vmem:[%s1660_s26 + $0x38] sm:$0xff]  ;;  %v915_v3 = vld [vmem:[%s1660_s26 + $0x30] sm:$0xff]  ;;  %v906_v4 = vld [vmem:[%s1652_s4 + $0x28] sm:$0xff]  ;;  %s1689_s30 = sshll.u32 %s406_s7, 3  ;;  %s401_s17 = scalar_lea.vmem [#allocation10], %s825_s11 }
  0x69   : > { %565 = vmatpush.bf16.msra.mxu1 %v916_v2  ;;  %v914_v5 = vld [vmem:[%s1660_s26 + $0x28] sm:$0xff]  ;;  %v905_v6 = vld [vmem:[%s1652_s4 + $0x20] sm:$0xff]  ;;  %v904_v8 = vld [vmem:[%s1652_s4 + $0x18] sm:$0xff]  ;;  %s408_s20 = scalar_lea.vmem [#allocation11], %s1689_s30  ;;  %s1858_s29 = sld [smem:[#allocation23_spill]] }
  0x6a   : > { %v913_v7 = vld [vmem:[%s1660_s26 + $0x20] sm:$0xff]  ;;  %v912_v9 = vld [vmem:[%s1660_s26 + $0x18] sm:$0xff]  ;;  %v903_v10 = vld [vmem:[%s1652_s4 + $0x10] sm:$0xff] }
  0x6b   : > { %v911_v11 = vld [vmem:[%s1660_s26 + $0x10] sm:$0xff]  ;;  %v902_v12 = vld [vmem:[%s1652_s4 + $0x8] sm:$0xff]  ;;  %v901_v13 = vld [vmem:[%s1652_s4] sm:$0xff] }
  0x6c   : > { %480 = vmatpush.bf16.msra.mxu0 %v907_v1  ;;  %v410_v14 = vld [vmem:[%s1641_s13] sm:$0xf]  ;;  %v910_v15 = vld [vmem:[%s1660_s26 + $0x8] sm:$0xff]  ;;  %v909_v16 = vld [vmem:[%s1660_s26] sm:$0xff] }
  0x6d   : > { %566 = vmatpush.bf16.msra.mxu1 %v915_v3  ;;  %v1066_v17 = vld [vmem:[%s350_s24] ss:$0 sm:$0xff] }
  0x6f   : > { %p891_p4 = scmp.ne.s32.totalorder %s1858_s29, 0 }
  0x70   : > { %481 = vmatpush.bf16.msra.mxu0 %v906_v4  ;;  %s1859_s9 = sld [smem:[#allocation37_spill]] (!%p891_p4) }
  0x71   : > { %567 = vmatpush.bf16.msra.mxu1 %v914_v5 }
  0x74   : > { %482 = vmatpush.bf16.msra.mxu0 %v905_v6 }
  0x75   : > { %568 = vmatpush.bf16.msra.mxu1 %v913_v7 }
  0x78   : > { %483 = vmatpush.bf16.msra.mxu0 %v904_v8 }
  0x79   : > { %569 = vmatpush.bf16.msra.mxu1 %v912_v9 }
  0x7c   : > { %484 = vmatpush.bf16.msra.mxu0 %v903_v10 }
  0x7d   : > { %570 = vmatpush.bf16.msra.mxu1 %v911_v11 }
  0x80   : > { %485 = vmatpush.bf16.msra.mxu0 %v902_v12 }
  0x81   : > { %571 = vmatpush.bf16.msra.mxu1 %v910_v15 }
  0x84   : > { %486 = vmatpush.bf16.msra.mxu0 %v901_v13 }
  0x85   : > { %572 = vmatpush.bf16.msra.mxu1 %v909_v16 }
  0x87   : > { %487 = vmatmul.bf16.vlgmr.msra.gmra.mxu0 %v410_v14 }
 0x104   : > { %v488_v18 = vpop.f32.mrf.mxu0 }
 0x105   : > { %v489_v19 = vadd.f32 %v1066_v17, %v488_v18 }
 0x107   : > { %v492_v20 = vmax.f32 %v489_v19, 0.0 }
 0x109   : > { %v493_v21 = vrot.slane %v492_v20, 4  ;;  %v500_v22 = vpack.c.bf16 %v492_v20, %v492_v20 }
 0x10b   : > { %v494_v23 = vadd.f32 %v493_v21, %v492_v20  ;;  %573 = vmatmul.bf16.vlgmr.msra.gmra.mxu1 %v500_v22 }
 0x10c   : > { %v490_v24 = vpop.f32.mrf.mxu0 }
 0x10d   : > { %v495_v25 = vrot.slane %v494_v23, 2 }
 0x10f   : > { %v496_v26 = vadd.f32 %v495_v25, %v494_v23 }
 0x111   : > { %v497_v27 = vrot.slane %v496_v26, 1 }
 0x113   : > { %v498_v28 = vadd.f32 %v497_v27, %v496_v26 }
 0x115   : > { %499 = vst [vmem:[%s408_s20] sm:$0xff] %v498_v28 }
 0x188   : > { %v574_v29 = vpop.f32.mrf.mxu1 }
 0x18c   : > { %581 = sbr.rel (%p891_p4) target bundleno = 405 (0x195), region = 60 }
 0x190   : > { %v576_v30 = vpop.f32.mrf.mxu1 }
 0x191   : > { %v1067_v31 = vld [vmem:[%s1859_s9] ss:$0 sm:$0xff] }
 0x192   : > { %v586_v32 = vadd.f32 %v1067_v31, %v574_v29 }
 0x194   : > { %587 = vst [vmem:[%s401_s17] sm:$0xff] %v586_v32 }
 0x195 PF: > { %s1860_s23 = sld [smem:[#allocation23_spill]] }
 0x19b   : > { %p892_p7 = scmp.le.s32.totalorder %s1860_s23, 0 }
 0x19d   : > { %591 = sbr.rel (%p892_p7) target bundleno = 422 (0x1a6), region = 64 }
 0x1a2   : > { %v592_v33 = vld [vmem:[%s401_s17] sm:$0xff] }
 0x1a3   : > { %v593_v34 = vadd.f32 %v592_v33, %v574_v29 }
 0x1a5   : > { %594 = vst [vmem:[%s401_s17] sm:$0xff] %v593_v34 }
 0x1a6 PF: > { %s1861_s0 = sld [smem:[#allocation24_spill]]  ;;  %s613_s19 = sshll.u32 %s401_s17, 4  ;;  %s614_s19 = int_to_ptr.vmem [resolvable:$true] %s613_s19 }
 0x1a7   : > { %s1862_s6 = sld [smem:[#allocation38_spill]]  ;;  %s596_s4 = scalar_lea.sflag [#allocation4], %s1637_s14 }
 0x1ac   : > { %s895_s25 = sshll.u32 %s1861_s0, 3 }
 0x1ad   : > { %s611_s12 = scalar_lea.hbm %s1862_s6, %s895_s25  ;;  %s1208_s29 = scalar_lea.hbm %s1862_s6, 24 }
 0x1ae   : > { %s615_s5 = sshll.u32 %s611_s12, 4  ;;  %s616_s5 = int_to_ptr.hbm [resolvable:$true] %s615_s5 }
 0x1af   : > { %s1202_s24 = sshra.s32 %s616_s5, 4  ;;  %s1203_s24 = int_to_ptr.hbm [resolvable:$true] %s1202_s24 }
 0x1b0   : > { %s1204_s15 = scalar_lea.hbm %s1203_s24, 8  ;;  %p1209_p3 = scmp.lt.s32.totalorder %s1203_s24, %s1862_s6 }
 0x1b1   : > { %p1205_p5 = scmp.ne.s32.totalorder %s1203_s24, %s1204_s15  ;;  %p1210_p0 = scmp.lt.s32.totalorder %s1208_s29, %s1204_s15 }
 0x1b3   : > { %p1206_p8 = pnand %p1205_p5, %p1576_p13  ;;  %p1211_p2 = por %p1210_p0, %p1209_p3 }
 0x1b5   : > { %p1207_p12 = pneg %p1206_p8 }
 0x1b7   : > { %p1212_p10 = pnand %p1211_p2, %p1207_p12 }
 0x1b9   : > { %1215 = shalt.err (!%p1212_p10)
}
 0x1ba   : > { %s1863_s14 = sld [smem:[#allocation23_spill]]  ;;  %s896_s17 = sshll.u32 %s1861_s0, 1 }
 0x1bb   : > { %925 = dma.vmem_to_hbm [thread:$0]  (%p1576_p13), %s614_s19, 128, %s616_s5, %s596_s4  }
 0x1bc   : > { %s629_s9 = sshll.u32 %s408_s20, 4  ;;  %s1864_s12 = sld [smem:[#allocation39_spill]]  ;;  %s630_s9 = int_to_ptr.vmem [resolvable:$true] %s629_s9 }
 0x1bd   : > { %s601_s16 = scalar_lea.sflag [#allocation12], %s406_s7 }
 0x1c0   : > { %s625_s23 = sadd.s32 %s1863_s14, %s896_s17 }
 0x1c1   : > { %s897_s25 = sshll.u32 %s625_s23, 3 }
 0x1c2   : > { %s627_s24 = scalar_lea.hbm %s1864_s12, %s897_s25  ;;  %s1236_s0 = scalar_lea.hbm %s1864_s12, 48 }
 0x1c3   : > { %s631_s15 = sshll.u32 %s627_s24, 4  ;;  %s632_s15 = int_to_ptr.hbm [resolvable:$true] %s631_s15 }
 0x1c4   : > { %s1230_s26 = sshra.s32 %s632_s15, 4  ;;  %s1231_s26 = int_to_ptr.hbm [resolvable:$true] %s1230_s26 }
 0x1c5   : > { %s1232_s11 = scalar_lea.hbm %s1231_s26, 8  ;;  %p1237_p7 = scmp.lt.s32.totalorder %s1231_s26, %s1864_s12 }
 0x1c6   : > { %p1233_p11 = scmp.ne.s32.totalorder %s1231_s26, %s1232_s11  ;;  %p1238_p5 = scmp.lt.s32.totalorder %s1236_s0, %s1232_s11 }
 0x1c8   : > { %p1234_p13 = pnand %p1233_p11, %p1597_p9  ;;  %p1239_p8 = por %p1238_p5, %p1237_p7 }
 0x1ca   : > { %p1235_p4 = pneg %p1234_p13 }
 0x1cc   : > { %p1240_p12 = pnand %p1239_p8, %p1235_p4 }
 0x1ce   : > { %1243 = shalt.err (!%p1240_p12)
}
 0x1cf   : > { %926 = dma.vmem_to_hbm [thread:$0]  (%p1597_p9), %s630_s9, 128, %s632_s15, %s601_s16  }
 0x1d0 PF: > { %p950_p3 = scmp.ge.s32.totalorder %s1374_s10, 2  ;;  %s643_s4 = sand.u32 1, %s1346_s27  }
 0x1d1   : > { %s644_s29 = scalar_lea.sflag [#allocation4], %s643_s4 }
 0x1d2   : > { %p943_p0 = pnand %p950_p3, %p1584_p1 }
 0x1d4   : > { %p944_p2 = pneg %p943_p0 }
 0x1d6   : > { %1313 = dma.done.wait (%p944_p2), %s644_s29, 128  }
 0x1d7   : > { %1315 = vsyncadd (%p944_p2), %s644_s29, 4294967168  ;;  %s1866_s1 = sld [smem:[#allocation18_spill]]  ;;  %p946_p10 = pnand %p950_p3, %p1601_p6 }
 0x1d9   : > { %p947_p11 = pneg %p946_p10 }
 0x1dd   : > { %s653_s14 = sand.u32 1, %s1866_s1  }
 0x1de   : > { %s654_s18 = scalar_lea.sflag [#allocation12], %s653_s14 }
 0x1df   : > { %1317 = dma.done.wait (%p947_p11), %s654_s18, 128  }
 0x1e0   : > { %1319 = vsyncadd (%p947_p11), %s654_s18, 4294967168  ;;  %s32_s10 = sadd.s32 1, %s1374_s10   ;;  %s1869_s27 = sld [smem:[#allocation19_spill]] }
 0x1e1   : > { %p1743_p9 = scmp.ge.s32.totalorder %s32_s10, 8   ;;  %s1870_s23 = sld [smem:[#allocation32_spill]] }
 0x1e2   : > { %s1871_s24 = sld [smem:[#allocation20_spill]]  ;;  %s1879_s21 = smov %s1326_s22 }
 0x1e3   : > { %s1872_s25 = sld [smem:[#allocation21_spill]]  ;;  %s1883_s30 = smov %s1366_s8 }
 0x1e4   : > { %s1873_s26 = sld [smem:[#allocation29_spill]] }
 0x1e5   : > { %s1874_s9 = sld [smem:[#allocation22_spill]] }
 0x1e6   : > { %s1875_s29 = sld [smem:[#allocation30_spill]]  ;;  %s1880_s22 = smov %s1869_s27 }
 0x1e7   : > { %s1876_s7 = sld [smem:[#allocation25_spill]]  ;;  %s1881_s27 = smov %s1350_s28 }
 0x1e8   : > { %s1877_s13 = sld [smem:[#allocation26_spill]] }
 0x1e9   : > { %s1878_s2 = sld [smem:[#allocation28_spill]] }
 0x1eb   : > { %s1882_s28 = smov %s1874_s9  ;;  %31 = sbr.rel (!%p1743_p9) target bundleno = 23 (0x17), region = 147 }
 0x1ee   : > { %s1884_s8 = smov %s1877_s13 }
 0x1ef   : > { %s1885_s9 = smov %s1878_s2 }
 0x1f0   :  { %660 = vsyncpa [#allocation3], 1 }
 0x1f1   :  { %662 = vsyncpa [#allocation3 + $0x1], 1 }
 0x1f2   :  { %663 = vsyncpa [#allocation6], 1 }
 0x1f3   :  { %665 = vsyncpa [#allocation6 + $0x1], 1 }
 0x1f4   :  { %666 = vsyncpa [#allocation9], 1 }
 0x1f5   :  { %668 = vsyncpa [#allocation9 + $0x1], 1 }
 0x1f6   :  { %669 = vsyncpa [#allocation4], 1 }
 0x1f7   :  { %671 = vsyncpa [#allocation4 + $0x1], 1 }
 0x1f8   :  { %672 = vsyncpa [#allocation12], 1 }
 0x1f9   :  { %674 = vsyncpa [#allocation12 + $0x1], 1 }

</bundles_post_ra>
